<compile_context>
chip_gen: v7x
topology: tpu7x:2x2x1
jax: 0.10.0
libtpu: 0.0.40
codegen_flags: <defaults>
</compile_context>

<pallas_src>
import functools

import jax
import jax.numpy as jnp
from jax.experimental import pallas as pl
from jax.experimental.pallas import tpu as pltpu


def _pick_th(H, WD, itemsize):
    """Rows of H per grid step: target ~2 MiB of HBM traffic per step."""
    target_bytes = 2 * 1024 * 1024
    bytes_per_row = 13 * WD * itemsize          # 6 (input) + 6 (target) + 1 (mask)
    th = int(target_bytes // max(1, bytes_per_row))
    if th >= H or H <= 8:
        return H                                 # full-extent block is always legal
    return max(8, (th // 8) * 8)                 # second-minor dim: multiple of 8


def _decom_kernel(x_ref, t_ref, m_ref, out_ref,
                  acc_iso, acc_an, acc_cnt, *, H, th):
    """One (batch b, H-tile i) grid step.

    x_ref / t_ref : (6, th, WD)  input / target tile (native dtype)
    m_ref         : (th, WD)     mask tile (0/1, native dtype)
    out_ref       : (8, 128)     per-batch result block;
                    row 0 lanes [0,1,2] = (iso_sum, aniso_sum, mask_count)
    acc_*         : (th, WD) f32 dense lane/sublane-parallel running sums
    """
    i = pl.program_id(1)
    nh = pl.num_programs(1)

    @pl.when(i == 0)
    def _init():
        acc_iso[...] = jnp.zeros_like(acc_iso)
        acc_an[...] = jnp.zeros_like(acc_an)
        acc_cnt[...] = jnp.zeros_like(acc_cnt)

    x = x_ref[...].astype(jnp.float32)           # (6, th, WD)
    t = t_ref[...].astype(jnp.float32)           # (6, th, WD)
    m = m_ref[...].astype(jnp.float32)           # (th, WD)
    d = x - t                                    # (6, th, WD)

    # Ragged last tile along H: zero out invalid rows (trace-time decision,
    # no cost at all when H divides evenly into th-row tiles).
    if H % th != 0:
        row = jax.lax.broadcasted_iota(jnp.int32, m.shape, 0)
        valid = (i * th + row) < H               # (th, WD)
        m = jnp.where(valid, m, 0.0)
        d = jnp.where(valid, d, 0.0)             # broadcast over channel axis

    # iso diff per voxel: (d0 + d3 + d5) / 3   -- channel slices are free
    iso = (d[0] + d[3] + d[5]) * (1.0 / 3.0)     # (th, WD)
    # aniso diff: d_c - iso at channels {0,3,5}, d_c elsewhere; sum of |.| over c
    an = (jnp.abs(d[0] - iso) + jnp.abs(d[1]) + jnp.abs(d[2])
          + jnp.abs(d[3] - iso) + jnp.abs(d[4]) + jnp.abs(d[5] - iso))

    acc_iso[...] += jnp.abs(iso) * m
    acc_an[...] += an * m
    acc_cnt[...] += m

    @pl.when(i == nh - 1)
    def _finalize():
        iso_s = jnp.sum(acc_iso[...])
        an_s = jnp.sum(acc_an[...])
        cnt_s = jnp.sum(acc_cnt[...])
        r8 = jax.lax.broadcasted_iota(jnp.int32, (8, 128), 0)
        c8 = jax.lax.broadcasted_iota(jnp.int32, (8, 128), 1)
        out_ref[...] = (jnp.where((r8 == 0) & (c8 == 0), iso_s, 0.0)
                        + jnp.where((r8 == 0) & (c8 == 1), an_s, 0.0)
                        + jnp.where((r8 == 0) & (c8 == 2), cnt_s, 0.0))


@jax.jit
def decom_loss(input_data, target, mask):
    """JAX/Pallas equivalent of DECOM_loss.forward (root_dir is unused upstream).

    input_data, target: [B, 6, H, W, D]
    mask:               [B, 1, K, H, W, D]  (bool or 0/1)
    Returns (iso_loss, aniso_loss) scalars.
    """
    B, C, H, W, D = input_data.shape
    assert C == 6
    WD = W * D

    # Pure reshapes (contiguous) — no transpose / pad / up-cast of the volumes.
    x = input_data.reshape(B, 6, H, WD)
    t = target.reshape(B, 6, H, WD)
    m = mask[:, 0, 0].reshape(B, H, WD).astype(input_data.dtype)

    itemsize = jnp.dtype(input_data.dtype).itemsize
    th = _pick_th(H, WD, itemsize)
    nh = -(-H // th)

    kernel = functools.partial(_decom_kernel, H=H, th=th)

    out = pl.pallas_call(
        kernel,
        out_shape=jax.ShapeDtypeStruct((B, 8, 128), jnp.float32),
        grid_spec=pltpu.PrefetchScalarGridSpec(
            num_scalar_prefetch=0,
            grid=(B, nh),
            in_specs=[
                pl.BlockSpec((None, 6, th, WD), lambda b, i: (b, 0, i, 0)),
                pl.BlockSpec((None, 6, th, WD), lambda b, i: (b, 0, i, 0)),
                pl.BlockSpec((None, th, WD), lambda b, i: (b, i, 0)),
            ],
            out_specs=pl.BlockSpec((None, 8, 128), lambda b, i: (b, 0, 0)),
            scratch_shapes=[
                pltpu.VMEM((th, WD), jnp.float32),
                pltpu.VMEM((th, WD), jnp.float32),
                pltpu.VMEM((th, WD), jnp.float32),
            ],
        ),
        compiler_params=pltpu.CompilerParams(
            dimension_semantics=("parallel", "arbitrary")),
    )(x, t, m)

    iso_sum = jnp.sum(out[:, 0, 0])
    an_sum = jnp.sum(out[:, 0, 1])
    cnt = jnp.sum(out[:, 0, 2])

    iso_loss = iso_sum / cnt               # F.l1_loss over masked iso elements
    aniso_loss = an_sum / (6.0 * cnt)      # mask expanded to 6 channels
    return iso_loss, aniso_loss


def _reference(input_data, target, mask):
    """Pure-JAX reference mirroring the PyTorch forward."""
    m = mask[:, :, 0, :, :, :].astype(bool)          # [B,1,H,W,D]
    mf = m.astype(jnp.float32)
    x = input_data.astype(jnp.float32)
    t = target.astype(jnp.float32)
    x_iso = (x[:, 0] + x[:, 3] + x[:, 5])[:, None] / 3.0   # [B,1,H,W,D]
    t_iso = (t[:, 0] + t[:, 3] + t[:, 5])[:, None] / 3.0
    zeros = jnp.zeros_like(x_iso)
    exp_x_iso = jnp.concatenate([x_iso, zeros, zeros, x_iso, zeros, x_iso], axis=1)
    exp_t_iso = jnp.concatenate([t_iso, zeros, zeros, t_iso, zeros, t_iso], axis=1)
    x_an = x - exp_x_iso
    t_an = t - exp_t_iso
    cnt = jnp.sum(mf)
    iso = jnp.sum(jnp.abs(x_iso - t_iso) * mf) / cnt
    aniso = jnp.sum(jnp.abs(x_an - t_an) * mf) / (6.0 * cnt)
    return iso, aniso


if __name__ == "__main__":
    key = jax.random.PRNGKey(0)
    k1, k2, k3 = jax.random.split(key, 3)

    B, C, H, W, D = 2, 6, 8, 8, 8
    input_data = jax.random.normal(k1, (B, C, H, W, D), dtype=jnp.float32)
    target = jax.random.normal(k2, (B, C, H, W, D), dtype=jnp.float32)
    # mask as in the module: [B, 1, K, H, W, D]; only index 0 along dim 2 is used.
    mask = (jax.random.uniform(k3, (B, 1, 2, H, W, D)) > 0.5)

    iso_loss, aniso_loss = decom_loss(input_data, target, mask)
    jax.block_until_ready((iso_loss, aniso_loss))

    ref_iso, ref_aniso = _reference(input_data, target, mask)
    assert jnp.allclose(iso_loss, ref_iso, rtol=1e-5, atol=1e-5), (iso_loss, ref_iso)
    assert jnp.allclose(aniso_loss, ref_aniso, rtol=1e-5, atol=1e-5), (aniso_loss, ref_aniso)

    print("KERNEL_OK")
</pallas_src>

<mosaic_0001>
module attributes {stable_mosaic.version = 11 : i64} {
  func.func @_decom_kernel(%arg0: i32, %arg1: i32, %arg2: memref<1x6x8x64xf32, #tpu.memory_space<vmem>>, %arg3: memref<1x6x8x64xf32, #tpu.memory_space<vmem>>, %arg4: memref<1x8x64xf32, #tpu.memory_space<vmem>>, %arg5: memref<1x8x128xf32, #tpu.memory_space<vmem>>, %arg6: memref<8x64xf32, #tpu.memory_space<vmem>>, %arg7: memref<8x64xf32, #tpu.memory_space<vmem>>, %arg8: memref<8x64xf32, #tpu.memory_space<vmem>>) attributes {dimension_semantics = [#tpu.dimension_semantics<parallel>, #tpu.dimension_semantics<arbitrary>], iteration_bounds = array<i64: 2, 1>, scalar_prefetch = 0 : i64, scratch_operands = 3 : i64, tpu.core_type = #tpu.core_type<tc>, window_params = [{transform_indices = @transform_0, window_bounds = array<i64: 1, 6, 8, 64>}, {transform_indices = @transform_1, window_bounds = array<i64: 1, 6, 8, 64>}, {transform_indices = @transform_2, window_bounds = array<i64: 1, 8, 64>}, {transform_indices = @transform_3, window_bounds = array<i64: 1, 8, 128>}]} {
    %c0_i32 = arith.constant 0 : i32
    %0 = arith.cmpi eq, %arg1, %c0_i32 : i32
    %1 = arith.extui %0 : i1 to i32
    %c0_i32_0 = arith.constant 0 : i32
    %2 = arith.cmpi ne, %1, %c0_i32_0 : i32
    scf.if %2 {
      %cst_25 = arith.constant 0.000000e+00 : f32
      %61 = vector.broadcast %cst_25 : f32 to vector<8x64xf32>
      %c0_26 = arith.constant 0 : index
      %c0_27 = arith.constant 0 : index
      %62 = vector.load %arg6[%c0_26, %c0_27] : memref<8x64xf32, #tpu.memory_space<vmem>>, vector<8x64xf32>
      tpu.vector_store %arg6[%c0_26, %c0_27], %61 {strides = array<i32>} : memref<8x64xf32, #tpu.memory_space<vmem>>, vector<8x64xf32>,
      %cst_28 = arith.constant 0.000000e+00 : f32
      %63 = vector.broadcast %cst_28 : f32 to vector<8x64xf32>
      %c0_29 = arith.constant 0 : index
      %c0_30 = arith.constant 0 : index
      %64 = vector.load %arg7[%c0_29, %c0_30] : memref<8x64xf32, #tpu.memory_space<vmem>>, vector<8x64xf32>
      tpu.vector_store %arg7[%c0_29, %c0_30], %63 {strides = array<i32>} : memref<8x64xf32, #tpu.memory_space<vmem>>, vector<8x64xf32>,
      %cst_31 = arith.constant 0.000000e+00 : f32
      %65 = vector.broadcast %cst_31 : f32 to vector<8x64xf32>
      %c0_32 = arith.constant 0 : index
      %c0_33 = arith.constant 0 : index
      %66 = vector.load %arg8[%c0_32, %c0_33] : memref<8x64xf32, #tpu.memory_space<vmem>>, vector<8x64xf32>
      tpu.vector_store %arg8[%c0_32, %c0_33], %65 {strides = array<i32>} : memref<8x64xf32, #tpu.memory_space<vmem>>, vector<8x64xf32>,
    } else {
    }
    %c0 = arith.constant 0 : index
    %c0_1 = arith.constant 0 : index
    %c0_2 = arith.constant 0 : index
    %c0_3 = arith.constant 0 : index
    %3 = vector.load %arg2[%c0, %c0_1, %c0_2, %c0_3] : memref<1x6x8x64xf32, #tpu.memory_space<vmem>>, vector<1x6x8x64xf32>
    %4 = vector.shape_cast %3 : vector<1x6x8x64xf32> to vector<6x8x64xf32>
    %c0_4 = arith.constant 0 : index
    %c0_5 = arith.constant 0 : index
    %c0_6 = arith.constant 0 : index
    %c0_7 = arith.constant 0 : index
    %5 = vector.load %arg3[%c0_4, %c0_5, %c0_6, %c0_7] : memref<1x6x8x64xf32, #tpu.memory_space<vmem>>, vector<1x6x8x64xf32>
    %6 = vector.shape_cast %5 : vector<1x6x8x64xf32> to vector<6x8x64xf32>
    %c0_8 = arith.constant 0 : index
    %c0_9 = arith.constant 0 : index
    %c0_10 = arith.constant 0 : index
    %7 = vector.load %arg4[%c0_8, %c0_9, %c0_10] : memref<1x8x64xf32, #tpu.memory_space<vmem>>, vector<1x8x64xf32>
    %8 = vector.shape_cast %7 : vector<1x8x64xf32> to vector<8x64xf32>
    %9 = arith.subf %4, %6 : vector<6x8x64xf32>
    %10 = vector.extract_strided_slice %9 {offsets = [0, 0, 0], sizes = [1, 8, 64], strides = [1, 1, 1]} : vector<6x8x64xf32> to vector<1x8x64xf32>
    %11 = vector.shape_cast %10 : vector<1x8x64xf32> to vector<8x64xf32>
    %12 = vector.extract_strided_slice %9 {offsets = [3, 0, 0], sizes = [1, 8, 64], strides = [1, 1, 1]} : vector<6x8x64xf32> to vector<1x8x64xf32>
    %13 = vector.shape_cast %12 : vector<1x8x64xf32> to vector<8x64xf32>
    %14 = arith.addf %11, %13 : vector<8x64xf32>
    %15 = vector.extract_strided_slice %9 {offsets = [5, 0, 0], sizes = [1, 8, 64], strides = [1, 1, 1]} : vector<6x8x64xf32> to vector<1x8x64xf32>
    %16 = vector.shape_cast %15 : vector<1x8x64xf32> to vector<8x64xf32>
    %17 = arith.addf %14, %16 : vector<8x64xf32>
    %cst = arith.constant 0.333333343 : f32
    %18 = vector.broadcast %cst : f32 to vector<8x64xf32>
    %19 = arith.mulf %17, %18 : vector<8x64xf32>
    %20 = vector.extract_strided_slice %9 {offsets = [0, 0, 0], sizes = [1, 8, 64], strides = [1, 1, 1]} : vector<6x8x64xf32> to vector<1x8x64xf32>
    %21 = vector.shape_cast %20 : vector<1x8x64xf32> to vector<8x64xf32>
    %22 = arith.subf %21, %19 : vector<8x64xf32>
    %23 = math.absf %22 : vector<8x64xf32>
    %24 = vector.extract_strided_slice %9 {offsets = [1, 0, 0], sizes = [1, 8, 64], strides = [1, 1, 1]} : vector<6x8x64xf32> to vector<1x8x64xf32>
    %25 = vector.shape_cast %24 : vector<1x8x64xf32> to vector<8x64xf32>
    %26 = math.absf %25 : vector<8x64xf32>
    %27 = arith.addf %23, %26 : vector<8x64xf32>
    %28 = vector.extract_strided_slice %9 {offsets = [2, 0, 0], sizes = [1, 8, 64], strides = [1, 1, 1]} : vector<6x8x64xf32> to vector<1x8x64xf32>
    %29 = vector.shape_cast %28 : vector<1x8x64xf32> to vector<8x64xf32>
    %30 = math.absf %29 : vector<8x64xf32>
    %31 = arith.addf %27, %30 : vector<8x64xf32>
    %32 = vector.extract_strided_slice %9 {offsets = [3, 0, 0], sizes = [1, 8, 64], strides = [1, 1, 1]} : vector<6x8x64xf32> to vector<1x8x64xf32>
    %33 = vector.shape_cast %32 : vector<1x8x64xf32> to vector<8x64xf32>
    %34 = arith.subf %33, %19 : vector<8x64xf32>
    %35 = math.absf %34 : vector<8x64xf32>
    %36 = arith.addf %31, %35 : vector<8x64xf32>
    %37 = vector.extract_strided_slice %9 {offsets = [4, 0, 0], sizes = [1, 8, 64], strides = [1, 1, 1]} : vector<6x8x64xf32> to vector<1x8x64xf32>
    %38 = vector.shape_cast %37 : vector<1x8x64xf32> to vector<8x64xf32>
    %39 = math.absf %38 : vector<8x64xf32>
    %40 = arith.addf %36, %39 : vector<8x64xf32>
    %41 = vector.extract_strided_slice %9 {offsets = [5, 0, 0], sizes = [1, 8, 64], strides = [1, 1, 1]} : vector<6x8x64xf32> to vector<1x8x64xf32>
    %42 = vector.shape_cast %41 : vector<1x8x64xf32> to vector<8x64xf32>
    %43 = arith.subf %42, %19 : vector<8x64xf32>
    %44 = math.absf %43 : vector<8x64xf32>
    %45 = arith.addf %40, %44 : vector<8x64xf32>
    %c0_11 = arith.constant 0 : index
    %c0_12 = arith.constant 0 : index
    %46 = vector.load %arg6[%c0_11, %c0_12] : memref<8x64xf32, #tpu.memory_space<vmem>>, vector<8x64xf32>
    %47 = math.absf %19 : vector<8x64xf32>
    %48 = arith.mulf %47, %8 : vector<8x64xf32>
    %49 = arith.addf %46, %48 : vector<8x64xf32>
    %c0_13 = arith.constant 0 : index
    %c0_14 = arith.constant 0 : index
    %50 = vector.load %arg6[%c0_13, %c0_14] : memref<8x64xf32, #tpu.memory_space<vmem>>, vector<8x64xf32>
    tpu.vector_store %arg6[%c0_13, %c0_14], %49 {strides = array<i32>} : memref<8x64xf32, #tpu.memory_space<vmem>>, vector<8x64xf32>,
    %c0_15 = arith.constant 0 : index
    %c0_16 = arith.constant 0 : index
    %51 = vector.load %arg7[%c0_15, %c0_16] : memref<8x64xf32, #tpu.memory_space<vmem>>, vector<8x64xf32>
    %52 = arith.mulf %45, %8 : vector<8x64xf32>
    %53 = arith.addf %51, %52 : vector<8x64xf32>
    %c0_17 = arith.constant 0 : index
    %c0_18 = arith.constant 0 : index
    %54 = vector.load %arg7[%c0_17, %c0_18] : memref<8x64xf32, #tpu.memory_space<vmem>>, vector<8x64xf32>
    tpu.vector_store %arg7[%c0_17, %c0_18], %53 {strides = array<i32>} : memref<8x64xf32, #tpu.memory_space<vmem>>, vector<8x64xf32>,
    %c0_19 = arith.constant 0 : index
    %c0_20 = arith.constant 0 : index
    %55 = vector.load %arg8[%c0_19, %c0_20] : memref<8x64xf32, #tpu.memory_space<vmem>>, vector<8x64xf32>
    %56 = arith.addf %55, %8 : vector<8x64xf32>
    %c0_21 = arith.constant 0 : index
    %c0_22 = arith.constant 0 : index
    %57 = vector.load %arg8[%c0_21, %c0_22] : memref<8x64xf32, #tpu.memory_space<vmem>>, vector<8x64xf32>
    tpu.vector_store %arg8[%c0_21, %c0_22], %56 {strides = array<i32>} : memref<8x64xf32, #tpu.memory_space<vmem>>, vector<8x64xf32>,
    %c0_i32_23 = arith.constant 0 : i32
    %58 = arith.cmpi eq, %arg1, %c0_i32_23 : i32
    %59 = arith.extui %58 : i1 to i32
    %c0_i32_24 = arith.constant 0 : i32
    %60 = arith.cmpi ne, %59, %c0_i32_24 : i32
    scf.if %60 {
      %c0_25 = arith.constant 0 : index
      %c0_26 = arith.constant 0 : index
      %61 = vector.load %arg6[%c0_25, %c0_26] : memref<8x64xf32, #tpu.memory_space<vmem>>, vector<8x64xf32>
      %62 = vector.shape_cast %61 : vector<8x64xf32> to vector<1x8x64xf32>
      %cst_27 = arith.constant dense<0.000000e+00> : vector<1xf32>
      %63 = vector.multi_reduction <add>, %62, %cst_27 [1, 2] : vector<1x8x64xf32> to vector<1xf32>
      %64 = vector.shape_cast %63 : vector<1xf32> to vector<1x1x1xf32>
      %65 = vector.extract %64[0, 0, 0] : f32 from vector<1x1x1xf32>
      %c0_28 = arith.constant 0 : index
      %c0_29 = arith.constant 0 : index
      %66 = vector.load %arg7[%c0_28, %c0_29] : memref<8x64xf32, #tpu.memory_space<vmem>>, vector<8x64xf32>
      %67 = vector.shape_cast %66 : vector<8x64xf32> to vector<1x8x64xf32>
      %cst_30 = arith.constant dense<0.000000e+00> : vector<1xf32>
      %68 = vector.multi_reduction <add>, %67, %cst_30 [1, 2] : vector<1x8x64xf32> to vector<1xf32>
      %69 = vector.shape_cast %68 : vector<1xf32> to vector<1x1x1xf32>
      %70 = vector.extract %69[0, 0, 0] : f32 from vector<1x1x1xf32>
      %c0_31 = arith.constant 0 : index
      %c0_32 = arith.constant 0 : index
      %71 = vector.load %arg8[%c0_31, %c0_32] : memref<8x64xf32, #tpu.memory_space<vmem>>, vector<8x64xf32>
      %72 = vector.shape_cast %71 : vector<8x64xf32> to vector<1x8x64xf32>
      %cst_33 = arith.constant dense<0.000000e+00> : vector<1xf32>
      %73 = vector.multi_reduction <add>, %72, %cst_33 [1, 2] : vector<1x8x64xf32> to vector<1xf32>
      %74 = vector.shape_cast %73 : vector<1xf32> to vector<1x1x1xf32>
      %75 = vector.extract %74[0, 0, 0] : f32 from vector<1x1x1xf32>
      %76 = tpu.iota {dimensions = array<i32: 0>} : vector<8x128xi32>
      %77 = tpu.iota {dimensions = array<i32: 1>} : vector<8x128xi32>
      %c0_i32_34 = arith.constant 0 : i32
      %78 = vector.broadcast %c0_i32_34 : i32 to vector<8x128xi32>
      %79 = arith.cmpi eq, %76, %78 : vector<8x128xi32>
      %c0_i32_35 = arith.constant 0 : i32
      %80 = vector.broadcast %c0_i32_35 : i32 to vector<8x128xi32>
      %81 = arith.cmpi eq, %77, %80 : vector<8x128xi32>
      %82 = arith.andi %79, %81 : vector<8x128xi1>
      %cst_36 = arith.constant 0.000000e+00 : f32
      %83 = vector.broadcast %65 : f32 to vector<8x128xf32>
      %84 = vector.broadcast %cst_36 : f32 to vector<8x128xf32>
      %85 = arith.select %82, %83, %84 : vector<8x128xi1>, vector<8x128xf32>
      %c0_i32_37 = arith.constant 0 : i32
      %86 = vector.broadcast %c0_i32_37 : i32 to vector<8x128xi32>
      %87 = arith.cmpi eq, %76, %86 : vector<8x128xi32>
      %c1_i32 = arith.constant 1 : i32
      %88 = vector.broadcast %c1_i32 : i32 to vector<8x128xi32>
      %89 = arith.cmpi eq, %77, %88 : vector<8x128xi32>
      %90 = arith.andi %87, %89 : vector<8x128xi1>
      %cst_38 = arith.constant 0.000000e+00 : f32
      %91 = vector.broadcast %70 : f32 to vector<8x128xf32>
      %92 = vector.broadcast %cst_38 : f32 to vector<8x128xf32>
      %93 = arith.select %90, %91, %92 : vector<8x128xi1>, vector<8x128xf32>
      %94 = arith.addf %85, %93 : vector<8x128xf32>
      %c0_i32_39 = arith.constant 0 : i32
      %95 = vector.broadcast %c0_i32_39 : i32 to vector<8x128xi32>
      %96 = arith.cmpi eq, %76, %95 : vector<8x128xi32>
      %c2_i32 = arith.constant 2 : i32
      %97 = vector.broadcast %c2_i32 : i32 to vector<8x128xi32>
      %98 = arith.cmpi eq, %77, %97 : vector<8x128xi32>
      %99 = arith.andi %96, %98 : vector<8x128xi1>
      %cst_40 = arith.constant 0.000000e+00 : f32
      %100 = vector.broadcast %75 : f32 to vector<8x128xf32>
      %101 = vector.broadcast %cst_40 : f32 to vector<8x128xf32>
      %102 = arith.select %99, %100, %101 : vector<8x128xi1>, vector<8x128xf32>
      %103 = arith.addf %94, %102 : vector<8x128xf32>
      %c0_41 = arith.constant 0 : index
      %c0_42 = arith.constant 0 : index
      %c0_43 = arith.constant 0 : index
      %104 = vector.load %arg5[%c0_41, %c0_42, %c0_43] : memref<1x8x128xf32, #tpu.memory_space<vmem>>, vector<1x8x128xf32>
      %105 = vector.shape_cast %104 : vector<1x8x128xf32> to vector<8x128xf32>
      %106 = vector.shape_cast %103 : vector<8x128xf32> to vector<1x8x128xf32>
      tpu.vector_store %arg5[%c0_41, %c0_42, %c0_43], %106 {strides = array<i32>} : memref<1x8x128xf32, #tpu.memory_space<vmem>>, vector<1x8x128xf32>,
    } else {
    }
    return
  }
  func.func @transform_0(%arg0: i32, %arg1: i32) -> (i32, i32, i32, i32) {
    %c0_i32 = arith.constant 0 : i32
    %c0_i32_0 = arith.constant 0 : i32
    %c0_i32_1 = arith.constant 0 : i32
    return %arg0, %c0_i32, %arg1, %c0_i32_0 : i32, i32, i32, i32
  }
  func.func @transform_1(%arg0: i32, %arg1: i32) -> (i32, i32, i32, i32) {
    %c0_i32 = arith.constant 0 : i32
    %c0_i32_0 = arith.constant 0 : i32
    %c0_i32_1 = arith.constant 0 : i32
    return %arg0, %c0_i32, %arg1, %c0_i32_0 : i32, i32, i32, i32
  }
  func.func @transform_2(%arg0: i32, %arg1: i32) -> (i32, i32, i32) {
    %c0_i32 = arith.constant 0 : i32
    %c0_i32_0 = arith.constant 0 : i32
    return %arg0, %arg1, %c0_i32 : i32, i32, i32
  }
  func.func @transform_3(%arg0: i32, %arg1: i32) -> (i32, i32, i32) {
    %c0_i32 = arith.constant 0 : i32
    %c0_i32_0 = arith.constant 0 : i32
    %c0_i32_1 = arith.constant 0 : i32
    return %arg0, %c0_i32, %c0_i32_0 : i32, i32, i32
  }
}

</mosaic_0001>

<bundles_post_ra>
// kernel: decom_loss.1
= control target key start
LH: loop header
LB: loop body
LE: loop exit
PB: predicated region body
PF: predicated region fallthrough
CT: control target
= control target key end

     0   :  { %s552_s12 = smov 0   ;;  %s554_s13 = smov 0   ;;  %s608_s0 = inlined_call_operand.vmem [shape: f32[2,6,8,64], index: 0, kind: input, shape index: {}]   ;;  %s609_s1 = inlined_call_operand.vmem [shape: f32[2,6,8,64], index: 1, kind: input, shape index: {}]   ;;  %s610_s2 = inlined_call_operand.vmem [shape: f32[2,8,64], index: 2, kind: input, shape index: {}]   ;;  %s611_s3 = inlined_call_operand.vmem [shape: f32[2,8,128], index: 3, kind: output, shape index: {}]  }
   0x1   :  { %s556_s14 = smov 0  }
   0x2 LB: > { %s25_s15 = sadd.s32 1, %s525_s13  ;;  %p468_p0 = scmp.ge.s32.totalorder %s529_s14, 1  ;;  %s529_s14 = sphi %s556_s14, %s13_s14   ;;  %s525_s13 = sphi %s554_s13, %s613_s13   ;;  %s521_s12 = sphi %s552_s12, %s612_s12  }
   0x3   : > { %p27_p1 = scmp.ge.s32.totalorder %s25_s15, 2  ;;  %p183_p2 = scmp.lt.s32.totalorder %s529_s14, 3 }
   0x5   : > { %s615_s15 = smov (%p27_p1, %s25_s15), 0  ;;  %p184_p3 = pnand %p468_p0, %p183_p2 }
   0x6   : > { %p224_p4 = scmp.lt.s32.totalorder (!%p184_p3), %s521_s12, 1  ;;  %vm255_vm0 = vcmask (!%p184_p3), 523264   ;;  %v531_v0 = vmov (!%p184_p3), 0.0  }
   0x7   : > { %187 = sbr.rel (%p184_p3) target bundleno = 266 (0x10a), region = 32  ;;  %256 = vst.msk [vmem:[#allocation2] sm:$0xff] (!%p184_p3), %vm255_vm0, %v531_v0  ;;  %257 = vst.msk [vmem:[#allocation3] sm:$0xff] (!%p184_p3), %vm255_vm0, %v531_v0 }
   0x8   : > { %258 = vst.msk [vmem:[#allocation4] sm:$0xff] (!%p184_p3), %vm255_vm0, %v531_v0 }
   0xe   : > { %s617_s12 = smov (!%p224_p4, %s521_s12), 1  ;;  %v295_v28 = vld [vmem:[#allocation2] sm:$0xff]  ;;  %v301_v46 = vld [vmem:[#allocation3] sm:$0xff] }
   0xf   : > { %s475_s16 = smul.u32 48, %s617_s12  ;;  %s471_s17 = sshll.u32 %s617_s12, 3  ;;  %v305_v11 = vld [vmem:[#allocation4] sm:$0xff] }
  0x10   : > { %s246_s20 = scalar_lea.vmem %s610_s2, %s471_s17  ;;  %s250_s5 = scalar_lea.vmem %s611_s3, %s471_s17 }
  0x11   : > { %s231_s23 = scalar_lea.vmem %s608_s0, %s475_s16  ;;  %s239_s26 = scalar_lea.vmem %s609_s1, %s475_s16  ;;  %v271_v7 = vld [vmem:[%s246_s20] sm:$0xff] }
  0x12   : > { %v259_v1 = vld [vmem:[%s231_s23] sm:$0xff]  ;;  %v262_v2 = vld [vmem:[%s231_s23 + $0x18] sm:$0xff]  ;;  %v264_v3 = vld [vmem:[%s231_s23 + $0x28] sm:$0xff]  ;;  %v306_v12 = vadd.f32 %v305_v11, %v271_v7 }
  0x13   : > { %v265_v4 = vld [vmem:[%s239_s26] sm:$0xff]  ;;  %v268_v5 = vld [vmem:[%s239_s26 + $0x18] sm:$0xff]  ;;  %v270_v6 = vld [vmem:[%s239_s26 + $0x28] sm:$0xff] }
  0x14   : > { %v272_v8 = vsub.f32 %v259_v1, %v265_v4  ;;  %v275_v9 = vsub.f32 %v262_v2, %v268_v5  ;;  %v277_v10 = vsub.f32 %v264_v3, %v270_v6  ;;  %v260_v13 = vld [vmem:[%s231_s23 + $0x8] sm:$0xff]  ;;  %307 = vst.msk [vmem:[#allocation4] sm:$0xff] %vm255_vm0, %v306_v12  ;;  %v261_v16 = vld [vmem:[%s231_s23 + $0x10] sm:$0xff]  ;;  %v263_v22 = vld [vmem:[%s231_s23 + $0x20] sm:$0xff] }
  0x15   : > { %v266_v14 = vld [vmem:[%s239_s26 + $0x8] sm:$0xff]  ;;  %v267_v17 = vld [vmem:[%s239_s26 + $0x10] sm:$0xff]  ;;  %v269_v23 = vld [vmem:[%s239_s26 + $0x20] sm:$0xff] }
  0x16   : > { %v278_v15 = vadd.f32 %v275_v9, %v272_v8  ;;  %v273_v19 = vsub.f32 %v260_v13, %v266_v14  ;;  %v274_v21 = vsub.f32 %v261_v16, %v267_v17  ;;  %v276_v31 = vsub.f32 %v263_v22, %v269_v23 }
  0x18   : > { %v279_v18 = vadd.f32 %v278_v15, %v277_v10  ;;  %v283_v26 = vand.u32 2147483647, %v273_v19  ;;  %v285_v33 = vand.u32 2147483647, %v274_v21  ;;  %v290_v40 = vand.u32 2147483647, %v276_v31 }
  0x1a   : > { %v280_v20 = vmul.f32 0.33333334, %v279_v18 }
  0x1b   : > { %v333_v30 = vld [vmem:[#allocation4] sm:$0xff] }
  0x1c   : > { %v296_v24 = vand.u32 2147483647, %v280_v20  ;;  %v281_v25 = vsub.f32 %v272_v8, %v280_v20  ;;  %v287_v27 = vsub.f32 %v275_v9, %v280_v20  ;;  %v334_v34 = vsel %vm255_vm0, %v333_v30, 0.0 }
  0x1d   : > { %335 = vadd.xlane.f32.xlu1 %v334_v34  ;;  %v292_v38 = vsub.f32 %v277_v10, %v280_v20  ;;  %v344_v9 = vlaneseq }
  0x1e   : > { %v297_v29 = vmul.f32 %v296_v24, %v271_v7  ;;  %v282_v32 = vand.u32 2147483647, %v281_v25  ;;  %v288_v37 = vand.u32 2147483647, %v287_v27 }
  0x1f   : > { %v293_v42 = vand.u32 2147483647, %v292_v38  ;;  %v345_v10 = vshrl.u32 %v344_v9, 7  ;;  %v347_v11 = vand.u32 127, %v344_v9 }
  0x20   : > { %v298_v35 = vadd.f32 %v297_v29, %v295_v28  ;;  %v284_v36 = vadd.f32 %v283_v26, %v282_v32 }
  0x21   : > { %vm348_vm1 = vcmp.eq.s32.totalorder %v345_v10, 0  ;;  %vm349_vm2 = vcmp.eq.s32.totalorder %v347_v11, 0  ;;  %vm353_vm3 = vcmp.eq.s32.totalorder %v347_v11, 1  ;;  %vm358_vm5 = vcmp.eq.s32.totalorder %v347_v11, 2 }
  0x22   : > { %300 = vst.msk [vmem:[#allocation2] sm:$0xff] %vm255_vm0, %v298_v35  ;;  %v286_v39 = vadd.f32 %v285_v33, %v284_v36  ;;  %vm350_vm4 = vmand %vm348_vm1, %vm349_vm2 }
  0x23   : > { %vm354_vm6 = vmand %vm348_vm1, %vm353_vm3 }
  0x24   : > { %v289_v41 = vadd.f32 %v288_v37, %v286_v39  ;;  %vm359_vm7 = vmand %vm348_vm1, %vm358_vm5 }
  0x26   : > { %v291_v43 = vadd.f32 %v290_v40, %v289_v41 }
  0x28   : > { %v294_v44 = vadd.f32 %v293_v42, %v291_v43 }
  0x29   : > { %v311_v45 = vld [vmem:[#allocation2] sm:$0xff] }
  0x2a   : > { %v312_v47 = vsel %vm255_vm0, %v311_v45, 0.0  ;;  %v302_v48 = vmul.f32 %v294_v44, %v271_v7 }
  0x2b   : > { %313 = vadd.xlane.f32.xlu0 %v312_v47 }
  0x2c   : > { %v303_v49 = vadd.f32 %v302_v48, %v301_v46 }
  0x2e   : > { %304 = vst.msk [vmem:[#allocation3] sm:$0xff] %vm255_vm0, %v303_v49 }
  0x35   : > { %v322_v50 = vld [vmem:[#allocation3] sm:$0xff] }
  0x36   : > { %v323_v51 = vsel %vm255_vm0, %v322_v50, 0.0 }
  0x37   : > { %324 = vadd.xlane.f32.xlu0 %v323_v51 }
  0xaa   : > { %v336_v54 = vpop.xlane.xlu1 %335 }
  0xab   : > { %v337_v56 = vrot.slane %v336_v54, 4 }
  0xad   : > { %v338_v59 = vadd.f32 %v337_v56, %v336_v54 }
  0xaf   : > { %v339_v62 = vrot.slane %v338_v59, 2 }
  0xb1   : > { %v340_v2 = vadd.f32 %v339_v62, %v338_v59 }
  0xb3   : > { %v341_v5 = vrot.slane %v340_v2, 1 }
  0xb5   : > { %v342_v8 = vadd.f32 %v341_v5, %v340_v2 }
  0xb8   : > { %v314_v52 = vpop.xlane.xlu0 %313 }
  0xb9   : > { %v315_v53 = vrot.slane %v314_v52, 4 }
  0xbb   : > { %v316_v55 = vadd.f32 %v315_v53, %v314_v52 }
  0xbd   : > { %v317_v57 = vrot.slane %v316_v55, 2 }
  0xbf   : > { %v318_v58 = vadd.f32 %v317_v57, %v316_v55 }
  0xc1   : > { %v319_v60 = vrot.slane %v318_v58, 1 }
  0xc3   : > { %v320_v61 = vadd.f32 %v319_v60, %v318_v58 }
  0xc4   : > { %v325_v63 = vpop.xlane.xlu0 %324 }
  0xc5   : > { %v326_v0 = vrot.slane %v325_v63, 4  ;;  %476 = vpush %v320_v61 }
  0xc7   : > { %v327_v1 = vadd.f32 %v326_v0, %v325_v63 }
  0xc9   : > { %v328_v3 = vrot.slane %v327_v1, 2 }
  0xcb   : > { %v329_v4 = vadd.f32 %v328_v3, %v327_v1 }
  0xcd   : > { %v330_v6 = vrot.slane %v329_v4, 1 }
  0xcf   : > { %v331_v7 = vadd.f32 %v330_v6, %v329_v4 }
  0xd1   : > { %478 = vpush %v331_v7 }
  0xd2   : > { %480 = vpush %v342_v8 }
  0xf6   : > { %s477_s27 = spop %476 }
  0xf7   : > { %v351_v12 = vstv %s477_s27 }
  0xf8   : > { %v352_v14 = vsel %vm350_vm4, %v351_v12, 0.0 }
 0x102   : > { %s479_s28 = spop %478 }
 0x103   : > { %v355_v13 = vstv %s479_s28  ;;  %s481_s29 = spop %480 }
 0x104   : > { %v356_v15 = vsel %vm354_vm6, %v355_v13, 0.0  ;;  %v360_v16 = vstv %s481_s29 }
 0x105   : > { %v357_v17 = vadd.f32 %v356_v15, %v352_v14  ;;  %v361_v18 = vsel %vm359_vm7, %v360_v16, 0.0 }
 0x107   : > { %v362_v19 = vadd.f32 %v361_v18, %v357_v17 }
 0x109   : > { %363 = vst [vmem:[%s250_s5] sm:$0xff] %v362_v19 }
 0x10a PF: > { %s13_s14 = sadd.s32 1, %s529_s14   ;;  %s612_s12 = smov %s525_s13 }
 0x10b   : > { %p10_p5 = scmp.ge.s32.totalorder %s13_s14, 4   ;;  %s613_s13 = smov %s615_s15 }
 0x10d   :  { %12 = sbr.rel (!%p10_p5) target bundleno = 2 (0x2), region = 76 }

</bundles_post_ra>
